<compile_context>
chip_gen: v6e
topology: v6e:2x2x1
jax: 0.10.0
libtpu: 0.0.40
codegen_flags: <defaults>
</compile_context>

<pallas_src>
import functools

import jax
import jax.numpy as jnp
from jax import lax
from jax.experimental import pallas as pl
from jax.experimental.pallas import tpu as pltpu

_NEG_INF = -1e30  # finite mask value (keeps online-softmax NaN-free on fully-masked rows)


# --------------------------- tile-size selection ---------------------------- #
def _pick_tile(dim, target, align):
    """Largest `align`-multiple tile <= target that divides dim (else full dim)."""
    if dim <= target:
        return dim
    t = (target // align) * align
    while t >= align:
        if dim % t == 0:
            return t
        t -= align
    return dim  # no aligned divisor: fall back to an untiled (full) axis


# ------------------------------ tiled matmul -------------------------------- #
def _matmul_kernel(x_ref, w_ref, o_ref, acc_ref):
    @pl.when(pl.program_id(2) == 0)
    def _init():
        acc_ref[...] = jnp.zeros(acc_ref.shape, acc_ref.dtype)

    acc_ref[...] += jnp.dot(x_ref[...], w_ref[...],
                            preferred_element_type=jnp.float32)

    @pl.when(pl.program_id(2) == pl.num_programs(2) - 1)
    def _finalize():
        o_ref[...] = acc_ref[...].astype(o_ref.dtype)


def matmul(x, w, *, tm_target=256, tn_target=256, tk_target=512):
    M, K = x.shape
    K2, N = w.shape
    assert K == K2
    tm = _pick_tile(M, tm_target, 8)
    tn = _pick_tile(N, tn_target, 128)
    tk = _pick_tile(K, tk_target, 128)
    grid = (M // tm, N // tn, K // tk)
    return pl.pallas_call(
        _matmul_kernel,
        out_shape=jax.ShapeDtypeStruct((M, N), x.dtype),
        grid_spec=pltpu.PrefetchScalarGridSpec(
            num_scalar_prefetch=0,
            grid=grid,
            in_specs=[
                pl.BlockSpec((tm, tk), lambda i, j, k: (i, k)),
                pl.BlockSpec((tk, tn), lambda i, j, k: (k, j)),
            ],
            out_specs=pl.BlockSpec((tm, tn), lambda i, j, k: (i, j)),
            scratch_shapes=[pltpu.VMEM((tm, tn), jnp.float32)],
        ),
        compiler_params=pltpu.CompilerParams(
            dimension_semantics=("parallel", "parallel", "arbitrary")),
    )(x, w)


# ----------------- flash causal GQA attention (RoPE fused) ------------------ #
def _flash_kernel(q_ref, k_ref, v_ref, cq_ref, sq_ref, ck_ref, sk_ref,
                  o_ref, q_scr, m_scr, l_scr, acc_scr,
                  *, scale, group, head_dim, tq, tkv):
    qi = pl.program_id(1)
    kj = pl.program_id(2)
    nkv = pl.num_programs(2)
    d2 = head_dim // 2

    @pl.when(kj == 0)
    def _init():
        m_scr[...] = jnp.full(m_scr.shape, _NEG_INF, m_scr.dtype)
        l_scr[...] = jnp.zeros(l_scr.shape, l_scr.dtype)
        acc_scr[...] = jnp.zeros(acc_scr.shape, acc_scr.dtype)
        # Fused neox RoPE on the q tile (rotate-half = XLU roll + signed-sin table),
        # softmax scale folded into q.  All `group` heads stacked along rows so the
        # QK^T / PV matmuls are (group*tq)-row MXU ops.
        cq = cq_ref[...]
        sq = sq_ref[...]
        for h in range(group):
            qh = q_ref[:, h * head_dim:(h + 1) * head_dim].astype(jnp.float32)
            qh = (qh * cq + pltpu.roll(qh, d2, axis=1) * sq) * scale
            q_scr[h * tq:(h + 1) * tq, :] = qh.astype(q_scr.dtype)

    # Causal tile skip: only KV tiles intersecting the lower triangle do work.
    @pl.when(kj * tkv <= qi * tq + (tq - 1))
    def _compute():
        # Fused RoPE on the K tile.
        k = k_ref[...].astype(jnp.float32)
        k = k * ck_ref[...] + pltpu.roll(k, d2, axis=1) * sk_ref[...]
        k = k.astype(v_ref.dtype)

        q = q_scr[...]  # (group*tq, D), rotated + pre-scaled
        # QK^T via dot_general contracting on D (no transposed K copy).
        s = lax.dot_general(q, k, (((1,), (1,)), ((), ())),
                            preferred_element_type=jnp.float32)  # (group*tq, tkv)

        qpos = qi * tq + lax.broadcasted_iota(jnp.int32, s.shape, 0) % tq
        kpos = kj * tkv + lax.broadcasted_iota(jnp.int32, s.shape, 1)
        s = jnp.where(kpos <= qpos, s, _NEG_INF)

        m_prev = m_scr[...]
        m_new = jnp.maximum(m_prev, jnp.max(s, axis=-1, keepdims=True))
        alpha = jnp.exp(m_prev - m_new)
        p = jnp.exp(s - m_new)
        l_scr[...] = alpha * l_scr[...] + jnp.sum(p, axis=-1, keepdims=True)
        acc_scr[...] = alpha * acc_scr[...] + lax.dot_general(
            p.astype(v_ref.dtype), v_ref[...], (((1,), (0,)), ((), ())),
            preferred_element_type=jnp.float32)
        m_scr[...] = m_new

    @pl.when(kj == nkv - 1)
    def _finalize():
        out = acc_scr[...] * pl.reciprocal(l_scr[...], approx=True)
        for h in range(group):
            o_ref[:, h * head_dim:(h + 1) * head_dim] = (
                out[h * tq:(h + 1) * tq, :].astype(o_ref.dtype))


def flash_gqa_attention(q, k, v, cos_ext, sin_ext, *,
                        num_heads, num_kv_heads, head_dim, scale,
                        tq=None, tkv=None):
    """q: [T, H*D], k/v: [T, KVH*D], cos_ext/sin_ext: [T, D] (f32). Returns [T, H*D]."""
    T = q.shape[0]
    group = num_heads // num_kv_heads
    if tq is None:
        tq = _pick_tile(T, 256, 8)
    if tkv is None:
        tkv = _pick_tile(T, 512, 8)
    grid = (num_kv_heads, T // tq, T // tkv)

    # Clamp the KV-tile index above the causal diagonal so skipped tiles reuse the
    # previously-loaded block (no redundant K/V DMA for masked-out tiles).
    def _kv_block(g, i, j):
        j_max = (i * tq + tq - 1) // tkv
        return (jnp.minimum(j, j_max), g)

    def _kv_rope_block(g, i, j):
        j_max = (i * tq + tq - 1) // tkv
        return (jnp.minimum(j, j_max), 0)

    kernel = functools.partial(_flash_kernel, scale=scale, group=group,
                               head_dim=head_dim, tq=tq, tkv=tkv)
    return pl.pallas_call(
        kernel,
        out_shape=jax.ShapeDtypeStruct((T, num_heads * head_dim), q.dtype),
        grid_spec=pltpu.PrefetchScalarGridSpec(
            num_scalar_prefetch=0,
            grid=grid,
            in_specs=[
                pl.BlockSpec((tq, group * head_dim), lambda g, i, j: (i, g)),  # q
                pl.BlockSpec((tkv, head_dim), _kv_block),                      # k
                pl.BlockSpec((tkv, head_dim), _kv_block),                      # v
                pl.BlockSpec((tq, head_dim), lambda g, i, j: (i, 0)),          # cos (q rows)
                pl.BlockSpec((tq, head_dim), lambda g, i, j: (i, 0)),          # sin (q rows)
                pl.BlockSpec((tkv, head_dim), _kv_rope_block),                 # cos (k rows)
                pl.BlockSpec((tkv, head_dim), _kv_rope_block),                 # sin (k rows)
            ],
            out_specs=pl.BlockSpec((tq, group * head_dim), lambda g, i, j: (i, g)),
            scratch_shapes=[
                pltpu.VMEM((group * tq, head_dim), q.dtype),      # rotated+scaled q
                pltpu.VMEM((group * tq, 1), jnp.float32),         # m (running max)
                pltpu.VMEM((group * tq, 1), jnp.float32),         # l (running denom)
                pltpu.VMEM((group * tq, head_dim), jnp.float32),  # acc
            ],
        ),
        compiler_params=pltpu.CompilerParams(
            dimension_semantics=("parallel", "parallel", "arbitrary")),
    )(q, k, v, cos_ext, sin_ext, cos_ext, sin_ext)


# ------------------------------- full forward -------------------------------- #
def llama_attention_forward(positions, hidden_states, wqkv, wo, *,
                            num_heads, num_kv_heads, head_dim, rope_theta=10000.0):
    T, _ = hidden_states.shape
    q_size = num_heads * head_dim
    kv_size = num_kv_heads * head_dim

    # qkv projection (tiled, pipelined Pallas matmul)
    qkv = matmul(hidden_states, wqkv)                       # [T, q_size + 2*kv_size]
    q = qkv[:, :q_size]                                     # token-major, no transposes
    k = qkv[:, q_size:q_size + kv_size]
    v = qkv[:, q_size + kv_size:]

    # RoPE tables in f32, packed to full-D (lane-dense) cos / signed-sin tables.
    inv_freq = 1.0 / (rope_theta ** (
        jnp.arange(0, head_dim, 2, dtype=jnp.float32) / head_dim))
    freqs = positions.astype(jnp.float32)[:, None] * inv_freq[None, :]   # [T, D/2]
    cos = jnp.cos(freqs)
    sin = jnp.sin(freqs)
    cos_ext = jnp.concatenate([cos, cos], axis=-1)          # [T, D]
    sin_ext = jnp.concatenate([-sin, sin], axis=-1)         # [T, D], signed for roll-based rotate-half

    # flash causal GQA attention with fused RoPE (Pallas kernel)
    o = flash_gqa_attention(q, k, v, cos_ext, sin_ext,
                            num_heads=num_heads, num_kv_heads=num_kv_heads,
                            head_dim=head_dim, scale=float(head_dim) ** -0.5)  # [T, H*D]

    # output projection (tiled Pallas matmul)
    return matmul(o, wo)


# ------------------------------- pure-JAX ref --------------------------------- #
def _reference(positions, hidden_states, wqkv, wo, *,
               num_heads, num_kv_heads, head_dim, rope_theta=10000.0):
    T, _ = hidden_states.shape
    q_size = num_heads * head_dim
    kv_size = num_kv_heads * head_dim
    qkv = hidden_states @ wqkv
    q, k, v = jnp.split(qkv, [q_size, q_size + kv_size], axis=-1)
    q = q.reshape(T, num_heads, head_dim)
    k = k.reshape(T, num_kv_heads, head_dim)
    v = v.reshape(T, num_kv_heads, head_dim)

    inv_freq = 1.0 / (rope_theta ** (
        jnp.arange(0, head_dim, 2, dtype=jnp.float32) / head_dim))
    freqs = positions.astype(jnp.float32)[:, None] * inv_freq[None, :]
    cos, sin = jnp.cos(freqs)[:, None, :], jnp.sin(freqs)[:, None, :]

    def rope(x):
        d2 = head_dim // 2
        x1, x2 = x[..., :d2], x[..., d2:]
        return jnp.concatenate([x1 * cos - x2 * sin, x2 * cos + x1 * sin], axis=-1)

    q, k = rope(q), rope(k)
    group = num_heads // num_kv_heads
    k = jnp.repeat(k, group, axis=1)
    v = jnp.repeat(v, group, axis=1)
    s = jnp.einsum("qhd,khd->hqk", q, k) * (head_dim ** -0.5)
    mask = jnp.tril(jnp.ones((T, T), bool))
    s = jnp.where(mask[None], s, -1e30)
    p = jax.nn.softmax(s, axis=-1)
    o = jnp.einsum("hqk,khd->qhd", p, v).reshape(T, q_size)
    return o @ wo


if __name__ == "__main__":
    # Small LLaMA-like config with realistic head_dim=128 (lane-dense blocks).
    hidden_size = 512
    num_heads = 4
    num_kv_heads = 2
    head_dim = hidden_size // num_heads   # 128
    T = 8

    key = jax.random.PRNGKey(0)
    k1, k2, k3 = jax.random.split(key, 3)
    hidden_states = jax.random.normal(k1, (T, hidden_size), dtype=jnp.float32)
    wqkv = 0.05 * jax.random.normal(
        k2, (hidden_size, (num_heads + 2 * num_kv_heads) * head_dim), dtype=jnp.float32)
    wo = 0.05 * jax.random.normal(
        k3, (num_heads * head_dim, hidden_size), dtype=jnp.float32)
    positions = jnp.arange(T, dtype=jnp.int32)

    out = llama_attention_forward(
        positions, hidden_states, wqkv, wo,
        num_heads=num_heads, num_kv_heads=num_kv_heads, head_dim=head_dim)
    out = jax.block_until_ready(out)

    ref = _reference(
        positions, hidden_states, wqkv, wo,
        num_heads=num_heads, num_kv_heads=num_kv_heads, head_dim=head_dim)
    assert out.shape == (T, hidden_size)
    assert jnp.allclose(out, ref, atol=2e-2, rtol=2e-2), float(jnp.max(jnp.abs(out - ref)))

    print("KERNEL_OK")
</pallas_src>

<mosaic_0001>
module attributes {stable_mosaic.version = 11 : i64} {
  func.func @_matmul_kernel(%arg0: i32, %arg1: i32, %arg2: i32, %arg3: memref<8x512xf32, #tpu.memory_space<vmem>>, %arg4: memref<512x256xf32, #tpu.memory_space<vmem>>, %arg5: memref<8x256xf32, #tpu.memory_space<vmem>>, %arg6: memref<8x256xf32, #tpu.memory_space<vmem>>) attributes {dimension_semantics = [#tpu.dimension_semantics<parallel>, #tpu.dimension_semantics<parallel>, #tpu.dimension_semantics<arbitrary>], iteration_bounds = array<i64: 1, 4, 1>, scalar_prefetch = 0 : i64, scratch_operands = 1 : i64, tpu.core_type = #tpu.core_type<tc>, window_params = [{transform_indices = @transform_0, window_bounds = array<i64: 8, 512>}, {transform_indices = @transform_1, window_bounds = array<i64: 512, 256>}, {transform_indices = @transform_2, window_bounds = array<i64: 8, 256>}]} {
    %c0_i32 = arith.constant 0 : i32
    %0 = arith.cmpi eq, %arg2, %c0_i32 : i32
    %1 = arith.extui %0 : i1 to i32
    %c0_i32_0 = arith.constant 0 : i32
    %2 = arith.cmpi ne, %1, %c0_i32_0 : i32
    scf.if %2 {
      %cst_10 = arith.constant 0.000000e+00 : f32
      %12 = vector.broadcast %cst_10 : f32 to vector<8x256xf32>
      %c0_11 = arith.constant 0 : index
      %c0_12 = arith.constant 0 : index
      %13 = vector.load %arg6[%c0_11, %c0_12] : memref<8x256xf32, #tpu.memory_space<vmem>>, vector<8x256xf32>
      tpu.vector_store %arg6[%c0_11, %c0_12], %12 {strides = array<i32>} : memref<8x256xf32, #tpu.memory_space<vmem>>, vector<8x256xf32>,
    } else {
    }
    %c0 = arith.constant 0 : index
    %c0_1 = arith.constant 0 : index
    %3 = vector.load %arg6[%c0, %c0_1] : memref<8x256xf32, #tpu.memory_space<vmem>>, vector<8x256xf32>
    %c0_2 = arith.constant 0 : index
    %c0_3 = arith.constant 0 : index
    %4 = vector.load %arg3[%c0_2, %c0_3] : memref<8x512xf32, #tpu.memory_space<vmem>>, vector<8x512xf32>
    %c0_4 = arith.constant 0 : index
    %c0_5 = arith.constant 0 : index
    %5 = vector.load %arg4[%c0_4, %c0_5] : memref<512x256xf32, #tpu.memory_space<vmem>>, vector<512x256xf32>
    %cst = arith.constant dense<0.000000e+00> : vector<8x256xf32>
    %6 = tpu.matmul %4, %5, %cst {dimension_numbers = #tpu.dot_dimension_numbers<[1], [0], [0], [1], [0, 0, 1, 1], [], []>} : vector<8x512xf32>, vector<512x256xf32>, vector<8x256xf32> -> vector<8x256xf32>
    %7 = arith.addf %3, %6 : vector<8x256xf32>
    %c0_6 = arith.constant 0 : index
    %c0_7 = arith.constant 0 : index
    %8 = vector.load %arg6[%c0_6, %c0_7] : memref<8x256xf32, #tpu.memory_space<vmem>>, vector<8x256xf32>
    tpu.vector_store %arg6[%c0_6, %c0_7], %7 {strides = array<i32>} : memref<8x256xf32, #tpu.memory_space<vmem>>, vector<8x256xf32>,
    %c0_i32_8 = arith.constant 0 : i32
    %9 = arith.cmpi eq, %arg2, %c0_i32_8 : i32
    %10 = arith.extui %9 : i1 to i32
    %c0_i32_9 = arith.constant 0 : i32
    %11 = arith.cmpi ne, %10, %c0_i32_9 : i32
    scf.if %11 {
      %c0_10 = arith.constant 0 : index
      %c0_11 = arith.constant 0 : index
      %12 = vector.load %arg6[%c0_10, %c0_11] : memref<8x256xf32, #tpu.memory_space<vmem>>, vector<8x256xf32>
      %c0_12 = arith.constant 0 : index
      %c0_13 = arith.constant 0 : index
      %13 = vector.load %arg5[%c0_12, %c0_13] : memref<8x256xf32, #tpu.memory_space<vmem>>, vector<8x256xf32>
      tpu.vector_store %arg5[%c0_12, %c0_13], %12 {strides = array<i32>} : memref<8x256xf32, #tpu.memory_space<vmem>>, vector<8x256xf32>,
    } else {
    }
    return
  }
  func.func @transform_0(%arg0: i32, %arg1: i32, %arg2: i32) -> (i32, i32) {
    %c0_i32 = arith.constant 0 : i32
    return %arg0, %arg2 : i32, i32
  }
  func.func @transform_1(%arg0: i32, %arg1: i32, %arg2: i32) -> (i32, i32) {
    %c0_i32 = arith.constant 0 : i32
    return %arg2, %arg1 : i32, i32
  }
  func.func @transform_2(%arg0: i32, %arg1: i32, %arg2: i32) -> (i32, i32) {
    %c0_i32 = arith.constant 0 : i32
    return %arg0, %arg1 : i32, i32
  }
}

</mosaic_0001>

<bundles_post_ra>
// kernel: tpu_custom_call.1
= control target key start
LH: loop header
LB: loop body
LE: loop exit
PB: predicated region body
PF: predicated region fallthrough
CT: control target
= control target key end

     0   :  { %7 = vsyncpa [#allocation4], 0  ;;  %s1179_s0 = inlined_call_operand.hbm [shape: f32[8,512], index: 0, kind: input, shape index: {}]   ;;  %s1180_s1 = inlined_call_operand.hbm [shape: f32[512,1024], index: 1, kind: input, shape index: {}]   ;;  %s1181_s2 = inlined_call_operand.hbm [shape: f32[8,1024], index: 2, kind: output, shape index: {}]  }
   0x1   :  { %8 = vsyncpa [#allocation7], 0 }
   0x2   :  { %10 = vsyncpa [#allocation7 + $0x1], 0 }
   0x3   :  { %11 = vsyncpa [#allocation5], 0 }
   0x4   :  { %13 = vsyncpa [#allocation5 + $0x1], 0  ;;  %s887_s9 = smov 0   ;;  %s889_s10 = smov 0  }
   0x5   :  { %s891_s11 = smov 0   ;;  %s893_s12 = smov 0  }
   0x6   :  { %s895_s13 = smov 0   ;;  %s897_s14 = smov 0  }
   0x7 LB: > { %s631_s15 = sadd.s32 4294967295, %s864_s14   ;;  %s632_s16 = sadd.s32 4294967294, %s864_s14   ;;  %s864_s14 = sphi %s897_s14, %s19_s14   ;;  %s860_s13 = sphi %s895_s13, %s1199_s13   ;;  %s856_s12 = sphi %s893_s12, %s1198_s12   ;;  %s852_s11 = sphi %s891_s11, %s1197_s11   ;;  %s848_s10 = sphi %s889_s10, %s1196_s10   ;;  %s844_s9 = sphi %s887_s9, %s1195_s9  }
   0x8   : > { %s75_s17 = sadd.s32 1, %s852_s11  ;;  %p82_p0 = scmp.ne.s32.totalorder %s852_s11, %s848_s10 }
   0x9   : > { %p83_p1 = scmp.eq.s32.totalorder %s864_s14, 0  ;;  %p88_p2 = scmp.ne.s32.totalorder %s848_s10, %s844_s9 }
   0xa   : > { %p925_p3 = scmp.eq.s32.totalorder %s631_s15, 0  ;;  %p114_p4 = scmp.eq.s32.totalorder %s631_s15, 3 }
   0xb   : > { %p929_p5 = por %p83_p1, %p82_p0  ;;  %p120_p6 = scmp.eq.s32.totalorder %s632_s16, 3 }
   0xc   : > { %p935_p7 = por %p925_p3, %p88_p2  ;;  %p939_p8 = por %p114_p4, %p82_p0 }
   0xd   : > { %p943_p9 = por %p120_p6, %p88_p2  ;;  %p633_p10 = scmp.ge.s32.totalorder %s864_s14, 1 }
   0xe   : > { %s1186_s20 = scalar_select %p935_p7, 1, 0 }
   0xf   : > { %s1187_s21 = scalar_select %p939_p8, 1, 0 }
  0x10   : > { %s1188_s22 = scalar_select %p943_p9, 1, 0 }
  0x11   : > { %p127_p11 = scmp.lt.s32.totalorder %s864_s14, 5  ;;  %s866_s24 = smov [#allocation3]  }
  0x12   : > { %s145_s25 = sshll.u32 %s866_s24, 4  ;;  %p671_p13 = scmp.lt.s32.totalorder %s864_s14, 4  ;;  %s146_s25 = int_to_ptr.vmem [resolvable:$true] %s145_s25 }
  0x13   : > { %p949_p12 = pnand %p633_p10, %p127_p11  ;;  %s34_s28 = sadd.s32 1, %s860_s13 }
  0x14   : > { %p958_p1 = pnand %p671_p13, %p929_p5  ;;  %p36_p4 = scmp.ge.s32.totalorder %s34_s28, 4 }
  0x15   : > { %p658_p0 = pneg %p949_p12  ;;  %s156_s29 = sand.u32 1, %s852_s11  }
  0x16   : > { %s737_s30 = scalar_lea.vmem %s146_s25, 512  ;;  %p745_p8 = scmp.lt.s32.totalorder %s146_s25, %s146_s25 }
  0x17   : > { %p964_p2 = pnand %p658_p0, %p925_p3  ;;  %p738_p10 = scmp.ne.s32.totalorder %s146_s25, %s737_s30 }
  0x18   : > { %p746_p5 = scmp.lt.s32.totalorder %s737_s30, %s737_s30 }
  0x19   : > { %p728_p6 = pneg %p964_p2 }
  0x1a   : > { %p747_p13 = por %p746_p5, %p745_p8 }
  0x1b   : > { %p740_p11 = pnand %p738_p10, %p728_p6 }
  0x1d   : > { %p741_p9 = pneg %p740_p11 }
  0x1f   : > { %p748_p7 = pnand %p747_p13, %p741_p9 }
  0x21   : > { %751 = shalt.err (!%p748_p7)
}
  0x22   : > { %661 = dma.hbm_to_vmem [thread:$0]  (!%p964_p2), %s1179_s0, 512, %s146_s25, [#allocation4]  }
  0x23   : > { %s1201_s28 = smov (%p36_p4, %s34_s28), 0  ;;  %s636_s5 = sshll.u32 %s156_s29, 10 }
  0x24   : > { %s71_s6 = ssub.s32 %s860_s13, %s1201_s28  ;;  %s648_s7 = sshll.u32 %s860_s13, 8 }
  0x25   : > { %p73_p0 = scmp.eq.s32.totalorder %s71_s6, 0  ;;  %s169_s16 = scalar_lea.hbm %s1180_s1, %s648_s7 }
  0x26   : > { %s160_s19 = scalar_lea.vmem [#allocation6], %s636_s5  ;;  %s157_s30 = scalar_lea.sflag [#allocation7], %s156_s29 }
  0x27   : > { %s170_s24 = sshll.u32 %s160_s19, 4  ;;  %p754_p7 = pneg %p958_p1  ;;  %s171_s24 = int_to_ptr.vmem [resolvable:$true] %s170_s24 }
  0x28   : > { %s988_s27 = scalar_select %p73_p0, %s852_s11, %s75_s17  }
  0x29   : > { %s765_s25 = scalar_lea.vmem %s171_s24, 16384  ;;  %s867_s3 = smov [#allocation6]  }
  0x2a   : > { %p766_p8 = scmp.ne.s32.totalorder %s171_s24, %s765_s25  ;;  %s770_s4 = sshll.u32 %s867_s3, 4  ;;  %s771_s4 = int_to_ptr.vmem [resolvable:$false] %s770_s4 }
  0x2b   : > { %s772_s6 = scalar_lea.vmem %s771_s4, 32768  ;;  %p773_p4 = scmp.lt.s32.totalorder %s171_s24, %s771_s4 }
  0x2c   : > { %p768_p9 = pnand %p766_p8, %p754_p7  ;;  %p774_p6 = scmp.lt.s32.totalorder %s772_s6, %s765_s25 }
  0x2e   : > { %p769_p2 = pneg %p768_p9  ;;  %p775_p10 = por %p774_p6, %p773_p4 }
  0x30   : > { %p776_p11 = pnand %p775_p10, %p769_p2 }
  0x32   : > { %779 = shalt.err (!%p776_p11)
}
  0x33   : > { %s868_s5 = smov 1024   ;;  %s869_s17 = smov 256  }
  0x34   : > { %s870_s7 = smov 16   ;;  %182 = sbr.rel (%p949_p12) target bundleno = 339 (0x153), region = 28 }
  0x35   : > { %665 = dma.hbm_to_vmem [thread:$0]  (!%p958_p1), %s169_s16, 16384, %s171_s24, %s157_s30, %s868_s5, %s869_s17, %s870_s7  }
  0x39   : > { %831 = dma.done.wait (%p925_p3), [#allocation4], 512  }
  0x3a   : > { %833 = vsyncadd (%p925_p3), [#allocation4], 4294966784  ;;  %s1001_s29 = sand.u32 1, %s848_s10   ;;  %p1192_p1 = scmp.ne.s32.totalorder %s1186_s20, 0 }
  0x3b   : > { %s641_s8 = sshll.u32 %s1001_s29, 10  ;;  %s189_s15 = scalar_lea.sflag [#allocation7], %s1001_s29 }
  0x3c   : > { %s1005_s19 = scalar_lea.vmem [#allocation6], %s641_s8 }
  0x3d   : > { %835 = dma.done.wait (%p1192_p1), %s189_s15, 16384  }
  0x3e   : > { %837 = vsyncadd (%p1192_p1), %s189_s15, 4294950912  ;;  %v260_v0 = vld [vmem:[%s1005_s19 + $0xf8] sm:$0xff]  ;;  %v259_v2 = vld [vmem:[%s1005_s19 + $0xf0] sm:$0xff]  ;;  %s642_s18 = sshll.u32 %s1001_s29, 4  ;;  %s649_s20 = sshll.u32 %s856_s12, 8 }
  0x3f   : > { %v324_v1 = vld [vmem:[%s1005_s19 + $0x2f8] sm:$0xff]  ;;  %357 = vmatprep.subr.mxu0 %v260_v0  ;;  %v323_v3 = vld [vmem:[%s1005_s19 + $0x2f0] sm:$0xff]  ;;  %v258_v4 = vld [vmem:[%s1005_s19 + $0xe8] sm:$0xff]  ;;  %s212_s23 = scalar_lea.vmem [#allocation8], %s642_s18  ;;  %s525_s30 = scalar_lea.hbm %s1181_s2, %s649_s20 }
  0x40   : > { %428 = vmatprep.subr.mxu1 %v324_v1  ;;  %v322_v5 = vld [vmem:[%s1005_s19 + $0x2e8] sm:$0xff]  ;;  %358 = vmatpush1.msra.mxu0 %v259_v2  ;;  %v257_v6 = vld [vmem:[%s1005_s19 + $0xe0] sm:$0xff]  ;;  %v256_v8 = vld [vmem:[%s1005_s19 + $0xd8] sm:$0xff]  ;;  %s527_s26 = sshll.u32 %s212_s23, 4  ;;  %s511_s25 = scalar_lea.sflag [#allocation5], %s1001_s29  ;;  %s528_s26 = int_to_ptr.vmem [resolvable:$true] %s527_s26 }
  0x41   : > { %429 = vmatpush1.msra.mxu1 %v323_v3  ;;  %v321_v7 = vld [vmem:[%s1005_s19 + $0x2e0] sm:$0xff]  ;;  %359 = vmatprep.subr.mxu0 %v258_v4  ;;  %v320_v9 = vld [vmem:[%s1005_s19 + $0x2d8] sm:$0xff]  ;;  %v255_v10 = vld [vmem:[%s1005_s19 + $0xd0] sm:$0xff]  ;;  %s780_s3 = scalar_lea.vmem %s528_s26, 256  ;;  %p1193_p12 = scmp.ne.s32.totalorder %s1187_s21, 0 }
  0x42   : > { %430 = vmatprep.subr.mxu1 %v322_v5  ;;  %v319_v11 = vld [vmem:[%s1005_s19 + $0x2d0] sm:$0xff]  ;;  %360 = vmatpush1.msra.mxu0 %v257_v6  ;;  %v254_v12 = vld [vmem:[%s1005_s19 + $0xc8] sm:$0xff]  ;;  %v253_v14 = vld [vmem:[%s1005_s19 + $0xc0] sm:$0xff]  ;;  %p781_p3 = scmp.ne.s32.totalorder %s528_s26, %s780_s3  ;;  %s871_s12 = smov [#allocation8]  }
  0x43   : > { %431 = vmatpush1.msra.mxu1 %v321_v7  ;;  %v318_v13 = vld [vmem:[%s1005_s19 + $0x2c8] sm:$0xff]  ;;  %361 = vmatprep.subr.mxu0 %v256_v8  ;;  %v317_v15 = vld [vmem:[%s1005_s19 + $0x2c0] sm:$0xff]  ;;  %v252_v16 = vld [vmem:[%s1005_s19 + $0xb8] sm:$0xff]  ;;  %s784_s4 = sshll.u32 %s871_s12, 4  ;;  %s785_s4 = int_to_ptr.vmem [resolvable:$false] %s784_s4 }
  0x44   : > { %432 = vmatprep.subr.mxu1 %v320_v9  ;;  %362 = vmatpush1.msra.mxu0 %v255_v10  ;;  %v316_v17 = vld [vmem:[%s1005_s19 + $0x2b8] sm:$0xff]  ;;  %v251_v18 = vld [vmem:[%s1005_s19 + $0xb0] sm:$0xff]  ;;  %v250_v20 = vld [vmem:[%s1005_s19 + $0xa8] sm:$0xff]  ;;  %p782_p5 = pnand %p781_p3, %p1193_p12  ;;  %s786_s6 = scalar_lea.vmem %s785_s4, 512 }
  0x45   : > { %433 = vmatpush1.msra.mxu1 %v319_v11  ;;  %363 = vmatprep.subr.mxu0 %v254_v12  ;;  %v315_v19 = vld [vmem:[%s1005_s19 + $0x2b0] sm:$0xff]  ;;  %v314_v21 = vld [vmem:[%s1005_s19 + $0x2a8] sm:$0xff]  ;;  %v249_v22 = vld [vmem:[%s1005_s19 + $0xa0] sm:$0xff]  ;;  %p787_p0 = scmp.lt.s32.totalorder %s528_s26, %s785_s4  ;;  %p788_p7 = scmp.lt.s32.totalorder %s786_s6, %s780_s3 }
  0x46   : > { %434 = vmatprep.subr.mxu1 %v318_v13  ;;  %364 = vmatpush1.msra.mxu0 %v253_v14  ;;  %v313_v23 = vld [vmem:[%s1005_s19 + $0x2a0] sm:$0xff]  ;;  %v248_v24 = vld [vmem:[%s1005_s19 + $0x98] sm:$0xff]  ;;  %v247_v26 = vld [vmem:[%s1005_s19 + $0x90] sm:$0xff]  ;;  %p783_p13 = pneg %p782_p5 }
  0x47   : > { %435 = vmatpush1.msra.mxu1 %v317_v15  ;;  %365 = vmatprep.subr.mxu0 %v252_v16  ;;  %v312_v25 = vld [vmem:[%s1005_s19 + $0x298] sm:$0xff]  ;;  %v311_v27 = vld [vmem:[%s1005_s19 + $0x290] sm:$0xff]  ;;  %v246_v28 = vld [vmem:[%s1005_s19 + $0x88] sm:$0xff]  ;;  %p789_p8 = por %p788_p7, %p787_p0 }
  0x48   : > { %436 = vmatprep.subr.mxu1 %v316_v17  ;;  %366 = vmatpush1.msra.mxu0 %v251_v18  ;;  %v310_v29 = vld [vmem:[%s1005_s19 + $0x288] sm:$0xff]  ;;  %v245_v30 = vld [vmem:[%s1005_s19 + $0x80] sm:$0xff]  ;;  %v244_v32 = vld [vmem:[%s1005_s19 + $0x78] sm:$0xff] }
  0x49   : > { %437 = vmatpush1.msra.mxu1 %v315_v19  ;;  %367 = vmatprep.subr.mxu0 %v250_v20  ;;  %v309_v31 = vld [vmem:[%s1005_s19 + $0x280] sm:$0xff]  ;;  %v308_v33 = vld [vmem:[%s1005_s19 + $0x278] sm:$0xff]  ;;  %v243_v34 = vld [vmem:[%s1005_s19 + $0x70] sm:$0xff]  ;;  %p790_p9 = pnand %p789_p8, %p783_p13 }
  0x4a   : > { %438 = vmatprep.subr.mxu1 %v314_v21  ;;  %368 = vmatpush1.msra.mxu0 %v249_v22  ;;  %v307_v35 = vld [vmem:[%s1005_s19 + $0x270] sm:$0xff]  ;;  %v242_v36 = vld [vmem:[%s1005_s19 + $0x68] sm:$0xff]  ;;  %v241_v38 = vld [vmem:[%s1005_s19 + $0x60] sm:$0xff] }
  0x4b   : > { %439 = vmatpush1.msra.mxu1 %v313_v23  ;;  %369 = vmatprep.subr.mxu0 %v248_v24  ;;  %v306_v37 = vld [vmem:[%s1005_s19 + $0x268] sm:$0xff]  ;;  %v305_v39 = vld [vmem:[%s1005_s19 + $0x260] sm:$0xff]  ;;  %v240_v40 = vld [vmem:[%s1005_s19 + $0x58] sm:$0xff] }
  0x4c   : > { %440 = vmatprep.subr.mxu1 %v312_v25  ;;  %370 = vmatpush1.msra.mxu0 %v247_v26  ;;  %v304_v41 = vld [vmem:[%s1005_s19 + $0x258] sm:$0xff]  ;;  %v239_v42 = vld [vmem:[%s1005_s19 + $0x50] sm:$0xff]  ;;  %v238_v44 = vld [vmem:[%s1005_s19 + $0x48] sm:$0xff] }
  0x4d   : > { %441 = vmatpush1.msra.mxu1 %v311_v27  ;;  %371 = vmatprep.subr.mxu0 %v246_v28  ;;  %v303_v43 = vld [vmem:[%s1005_s19 + $0x250] sm:$0xff]  ;;  %v302_v45 = vld [vmem:[%s1005_s19 + $0x248] sm:$0xff]  ;;  %v237_v46 = vld [vmem:[%s1005_s19 + $0x40] sm:$0xff] }
  0x4e   : > { %442 = vmatprep.subr.mxu1 %v310_v29  ;;  %372 = vmatpush1.msra.mxu0 %v245_v30  ;;  %v301_v47 = vld [vmem:[%s1005_s19 + $0x240] sm:$0xff]  ;;  %v236_v48 = vld [vmem:[%s1005_s19 + $0x38] sm:$0xff]  ;;  %v235_v50 = vld [vmem:[%s1005_s19 + $0x30] sm:$0xff] }
  0x4f   : > { %443 = vmatpush1.msra.mxu1 %v309_v31  ;;  %373 = vmatprep.subr.mxu0 %v244_v32  ;;  %v300_v49 = vld [vmem:[%s1005_s19 + $0x238] sm:$0xff]  ;;  %v299_v51 = vld [vmem:[%s1005_s19 + $0x230] sm:$0xff]  ;;  %v234_v52 = vld [vmem:[%s1005_s19 + $0x28] sm:$0xff] }
  0x50   : > { %444 = vmatprep.subr.mxu1 %v308_v33  ;;  %374 = vmatpush1.msra.mxu0 %v243_v34  ;;  %v298_v53 = vld [vmem:[%s1005_s19 + $0x228] sm:$0xff]  ;;  %v233_v54 = vld [vmem:[%s1005_s19 + $0x20] sm:$0xff]  ;;  %v232_v56 = vld [vmem:[%s1005_s19 + $0x18] sm:$0xff] }
  0x51   : > { %445 = vmatpush1.msra.mxu1 %v307_v35  ;;  %375 = vmatprep.subr.mxu0 %v242_v36  ;;  %v297_v55 = vld [vmem:[%s1005_s19 + $0x220] sm:$0xff]  ;;  %v296_v57 = vld [vmem:[%s1005_s19 + $0x218] sm:$0xff]  ;;  %v231_v58 = vld [vmem:[%s1005_s19 + $0x10] sm:$0xff] }
  0x52   : > { %446 = vmatprep.subr.mxu1 %v306_v37  ;;  %376 = vmatpush1.msra.mxu0 %v241_v38  ;;  %v295_v59 = vld [vmem:[%s1005_s19 + $0x210] sm:$0xff]  ;;  %v230_v60 = vld [vmem:[%s1005_s19 + $0x8] sm:$0xff]  ;;  %v229_v62 = vld [vmem:[%s1005_s19] sm:$0xff] }
  0x53   : > { %447 = vmatpush1.msra.mxu1 %v305_v39  ;;  %377 = vmatprep.subr.mxu0 %v240_v40  ;;  %v294_v61 = vld [vmem:[%s1005_s19 + $0x208] sm:$0xff]  ;;  %v293_v63 = vld [vmem:[%s1005_s19 + $0x200] sm:$0xff]  ;;  %v292_v0 = vld [vmem:[%s1005_s19 + $0x1f8] sm:$0xff] }
  0x54   : > { %448 = vmatprep.subr.mxu1 %v304_v41  ;;  %378 = vmatpush1.msra.mxu0 %v239_v42  ;;  %v356_v1 = vld [vmem:[%s1005_s19 + $0x3f8] sm:$0xff]  ;;  %v291_v2 = vld [vmem:[%s1005_s19 + $0x1f0] sm:$0xff]  ;;  %v290_v4 = vld [vmem:[%s1005_s19 + $0x1e8] sm:$0xff] }
  0x55   : > { %449 = vmatpush1.msra.mxu1 %v303_v43  ;;  %379 = vmatprep.subr.mxu0 %v238_v44  ;;  %v355_v3 = vld [vmem:[%s1005_s19 + $0x3f0] sm:$0xff]  ;;  %v354_v5 = vld [vmem:[%s1005_s19 + $0x3e8] sm:$0xff]  ;;  %v289_v6 = vld [vmem:[%s1005_s19 + $0x1e0] sm:$0xff] }
  0x56   : > { %450 = vmatprep.subr.mxu1 %v302_v45  ;;  %380 = vmatpush1.msra.mxu0 %v237_v46  ;;  %v353_v7 = vld [vmem:[%s1005_s19 + $0x3e0] sm:$0xff]  ;;  %v288_v8 = vld [vmem:[%s1005_s19 + $0x1d8] sm:$0xff]  ;;  %v287_v10 = vld [vmem:[%s1005_s19 + $0x1d0] sm:$0xff] }
  0x57   : > { %451 = vmatpush1.msra.mxu1 %v301_v47  ;;  %381 = vmatprep.subr.mxu0 %v236_v48  ;;  %v352_v9 = vld [vmem:[%s1005_s19 + $0x3d8] sm:$0xff]  ;;  %v351_v11 = vld [vmem:[%s1005_s19 + $0x3d0] sm:$0xff]  ;;  %v286_v12 = vld [vmem:[%s1005_s19 + $0x1c8] sm:$0xff] }
  0x58   : > { %452 = vmatprep.subr.mxu1 %v300_v49  ;;  %382 = vmatpush1.msra.mxu0 %v235_v50  ;;  %v350_v13 = vld [vmem:[%s1005_s19 + $0x3c8] sm:$0xff]  ;;  %v285_v14 = vld [vmem:[%s1005_s19 + $0x1c0] sm:$0xff]  ;;  %v284_v16 = vld [vmem:[%s1005_s19 + $0x1b8] sm:$0xff] }
  0x59   : > { %453 = vmatpush1.msra.mxu1 %v299_v51  ;;  %383 = vmatprep.subr.mxu0 %v234_v52  ;;  %v349_v15 = vld [vmem:[%s1005_s19 + $0x3c0] sm:$0xff]  ;;  %v348_v17 = vld [vmem:[%s1005_s19 + $0x3b8] sm:$0xff]  ;;  %v283_v18 = vld [vmem:[%s1005_s19 + $0x1b0] sm:$0xff] }
  0x5a   : > { %454 = vmatprep.subr.mxu1 %v298_v53  ;;  %384 = vmatpush1.msra.mxu0 %v233_v54  ;;  %v347_v19 = vld [vmem:[%s1005_s19 + $0x3b0] sm:$0xff]  ;;  %v282_v20 = vld [vmem:[%s1005_s19 + $0x1a8] sm:$0xff]  ;;  %v281_v22 = vld [vmem:[%s1005_s19 + $0x1a0] sm:$0xff] }
  0x5b   : > { %455 = vmatpush1.msra.mxu1 %v297_v55  ;;  %385 = vmatprep.subr.mxu0 %v232_v56  ;;  %v346_v21 = vld [vmem:[%s1005_s19 + $0x3a8] sm:$0xff]  ;;  %v345_v23 = vld [vmem:[%s1005_s19 + $0x3a0] sm:$0xff]  ;;  %v280_v24 = vld [vmem:[%s1005_s19 + $0x198] sm:$0xff] }
  0x5c   : > { %456 = vmatprep.subr.mxu1 %v296_v57  ;;  %386 = vmatpush1.msra.mxu0 %v231_v58  ;;  %v344_v25 = vld [vmem:[%s1005_s19 + $0x398] sm:$0xff]  ;;  %v279_v26 = vld [vmem:[%s1005_s19 + $0x190] sm:$0xff]  ;;  %v278_v28 = vld [vmem:[%s1005_s19 + $0x188] sm:$0xff] }
  0x5d   : > { %457 = vmatpush1.msra.mxu1 %v295_v59  ;;  %387 = vmatprep.subr.mxu0 %v230_v60  ;;  %v343_v27 = vld [vmem:[%s1005_s19 + $0x390] sm:$0xff]  ;;  %v342_v29 = vld [vmem:[%s1005_s19 + $0x388] sm:$0xff]  ;;  %v277_v30 = vld [vmem:[%s1005_s19 + $0x180] sm:$0xff] }
  0x5e   : > { %458 = vmatprep.subr.mxu1 %v294_v61  ;;  %388 = vmatpush1.msra.mxu0 %v229_v62  ;;  %v341_v31 = vld [vmem:[%s1005_s19 + $0x380] sm:$0xff]  ;;  %v276_v32 = vld [vmem:[%s1005_s19 + $0x178] sm:$0xff]  ;;  %v275_v34 = vld [vmem:[%s1005_s19 + $0x170] sm:$0xff] }
  0x5f   : > { %459 = vmatpush1.msra.mxu1 %v293_v63  ;;  %389 = vmatprep.subr.mxu0 %v292_v0  ;;  %v340_v33 = vld [vmem:[%s1005_s19 + $0x378] sm:$0xff]  ;;  %v339_v35 = vld [vmem:[%s1005_s19 + $0x370] sm:$0xff]  ;;  %v274_v36 = vld [vmem:[%s1005_s19 + $0x168] sm:$0xff] }
  0x60   : > { %460 = vmatprep.subr.mxu1 %v356_v1  ;;  %390 = vmatpush2.msra.mxu0 %v291_v2  ;;  %v338_v37 = vld [vmem:[%s1005_s19 + $0x368] sm:$0xff]  ;;  %v273_v38 = vld [vmem:[%s1005_s19 + $0x160] sm:$0xff]  ;;  %v272_v40 = vld [vmem:[%s1005_s19 + $0x158] sm:$0xff] }
  0x61   : > { %461 = vmatpush2.msra.mxu1 %v355_v3  ;;  %391 = vmatprep.subr.mxu0 %v290_v4  ;;  %v337_v39 = vld [vmem:[%s1005_s19 + $0x360] sm:$0xff]  ;;  %v336_v41 = vld [vmem:[%s1005_s19 + $0x358] sm:$0xff]  ;;  %v271_v42 = vld [vmem:[%s1005_s19 + $0x150] sm:$0xff] }
  0x62   : > { %462 = vmatprep.subr.mxu1 %v354_v5  ;;  %392 = vmatpush2.msra.mxu0 %v289_v6  ;;  %v335_v43 = vld [vmem:[%s1005_s19 + $0x350] sm:$0xff]  ;;  %v270_v44 = vld [vmem:[%s1005_s19 + $0x148] sm:$0xff]  ;;  %v269_v46 = vld [vmem:[%s1005_s19 + $0x140] sm:$0xff] }
  0x63   : > { %463 = vmatpush2.msra.mxu1 %v353_v7  ;;  %393 = vmatprep.subr.mxu0 %v288_v8  ;;  %v334_v45 = vld [vmem:[%s1005_s19 + $0x348] sm:$0xff]  ;;  %v333_v47 = vld [vmem:[%s1005_s19 + $0x340] sm:$0xff]  ;;  %v268_v48 = vld [vmem:[%s1005_s19 + $0x138] sm:$0xff] }
  0x64   : > { %464 = vmatprep.subr.mxu1 %v352_v9  ;;  %394 = vmatpush2.msra.mxu0 %v287_v10  ;;  %v332_v49 = vld [vmem:[%s1005_s19 + $0x338] sm:$0xff]  ;;  %v267_v50 = vld [vmem:[%s1005_s19 + $0x130] sm:$0xff]  ;;  %v266_v52 = vld [vmem:[%s1005_s19 + $0x128] sm:$0xff] }
  0x65   : > { %465 = vmatpush2.msra.mxu1 %v351_v11  ;;  %395 = vmatprep.subr.mxu0 %v286_v12  ;;  %v331_v51 = vld [vmem:[%s1005_s19 + $0x330] sm:$0xff]  ;;  %v330_v53 = vld [vmem:[%s1005_s19 + $0x328] sm:$0xff]  ;;  %v265_v54 = vld [vmem:[%s1005_s19 + $0x120] sm:$0xff] }
  0x66   : > { %466 = vmatprep.subr.mxu1 %v350_v13  ;;  %396 = vmatpush2.msra.mxu0 %v285_v14  ;;  %v329_v55 = vld [vmem:[%s1005_s19 + $0x320] sm:$0xff]  ;;  %v264_v56 = vld [vmem:[%s1005_s19 + $0x118] sm:$0xff]  ;;  %v263_v58 = vld [vmem:[%s1005_s19 + $0x110] sm:$0xff] }
  0x67   : > { %467 = vmatpush2.msra.mxu1 %v349_v15  ;;  %397 = vmatprep.subr.mxu0 %v284_v16  ;;  %v328_v57 = vld [vmem:[%s1005_s19 + $0x318] sm:$0xff]  ;;  %v327_v59 = vld [vmem:[%s1005_s19 + $0x310] sm:$0xff]  ;;  %v262_v60 = vld [vmem:[%s1005_s19 + $0x108] sm:$0xff] }
  0x68   : > { %468 = vmatprep.subr.mxu1 %v348_v17  ;;  %398 = vmatpush2.msra.mxu0 %v283_v18  ;;  %v326_v61 = vld [vmem:[%s1005_s19 + $0x308] sm:$0xff]  ;;  %v261_v62 = vld [vmem:[%s1005_s19 + $0x100] sm:$0xff]  ;;  %v228_v1 = vld [vmem:[#allocation3 + $0x18] sm:$0xff] }
  0x69   : > { %469 = vmatpush2.msra.mxu1 %v347_v19  ;;  %399 = vmatprep.subr.mxu0 %v282_v20  ;;  %v226_v63 = vld [vmem:[#allocation3 + $0x8] sm:$0xff]  ;;  %v325_v0 = vld [vmem:[%s1005_s19 + $0x300] sm:$0xff]  ;;  %v227_v3 = vld [vmem:[#allocation3 + $0x10] sm:$0xff] }
  0x6a   : > { %470 = vmatprep.subr.mxu1 %v346_v21  ;;  %400 = vmatpush2.msra.mxu0 %v281_v22  ;;  %v225_v2 = vld [vmem:[#allocation3] sm:$0xff] }
  0x6b   : > { %471 = vmatpush2.msra.mxu1 %v345_v23  ;;  %401 = vmatprep.subr.mxu0 %v280_v24 }
  0x6c   : > { %472 = vmatprep.subr.mxu1 %v344_v25  ;;  %402 = vmatpush2.msra.mxu0 %v279_v26 }
  0x6d   : > { %473 = vmatpush2.msra.mxu1 %v343_v27  ;;  %403 = vmatprep.subr.mxu0 %v278_v28 }
  0x6e   : > { %474 = vmatprep.subr.mxu1 %v342_v29  ;;  %404 = vmatpush2.msra.mxu0 %v277_v30 }
  0x6f   : > { %475 = vmatpush2.msra.mxu1 %v341_v31  ;;  %405 = vmatprep.subr.mxu0 %v276_v32 }
  0x70   : > { %476 = vmatprep.subr.mxu1 %v340_v33  ;;  %406 = vmatpush2.msra.mxu0 %v275_v34 }
  0x71   : > { %477 = vmatpush2.msra.mxu1 %v339_v35  ;;  %407 = vmatprep.subr.mxu0 %v274_v36 }
  0x72   : > { %478 = vmatprep.subr.mxu1 %v338_v37  ;;  %408 = vmatpush2.msra.mxu0 %v273_v38 }
  0x73   : > { %479 = vmatpush2.msra.mxu1 %v337_v39  ;;  %409 = vmatprep.subr.mxu0 %v272_v40 }
  0x74   : > { %480 = vmatprep.subr.mxu1 %v336_v41  ;;  %410 = vmatpush2.msra.mxu0 %v271_v42 }
  0x75   : > { %481 = vmatpush2.msra.mxu1 %v335_v43  ;;  %411 = vmatprep.subr.mxu0 %v270_v44 }
  0x76   : > { %482 = vmatprep.subr.mxu1 %v334_v45  ;;  %412 = vmatpush2.msra.mxu0 %v269_v46 }
  0x77   : > { %483 = vmatpush2.msra.mxu1 %v333_v47  ;;  %413 = vmatprep.subr.mxu0 %v268_v48 }
  0x78   : > { %484 = vmatprep.subr.mxu1 %v332_v49  ;;  %414 = vmatpush2.msra.mxu0 %v267_v50 }
  0x79   : > { %485 = vmatpush2.msra.mxu1 %v331_v51  ;;  %415 = vmatprep.subr.mxu0 %v266_v52 }
  0x7a   : > { %486 = vmatprep.subr.mxu1 %v330_v53  ;;  %416 = vmatpush2.msra.mxu0 %v265_v54 }
  0x7b   : > { %487 = vmatpush2.msra.mxu1 %v329_v55  ;;  %417 = vmatprep.subr.mxu0 %v264_v56 }
  0x7c   : > { %488 = vmatprep.subr.mxu1 %v328_v57  ;;  %418 = vmatpush2.msra.mxu0 %v263_v58 }
  0x7d   : > { %489 = vmatpush2.msra.mxu1 %v327_v59  ;;  %419 = vmatprep.subr.mxu0 %v262_v60 }
  0x7e   : > { %490 = vmatprep.subr.mxu1 %v326_v61  ;;  %420 = vmatpush2.msra.mxu0 %v261_v62 }
  0x7f   : > { %421 = vmatprep.mubr.f32.mxu0 %v226_v63  ;;  %491 = vmatpush2.msra.mxu1 %v325_v0 }
  0x80   : > { %492 = vmatprep.mubr.f32.mxu1 %v228_v1  ;;  %422 = vmatmul.mubr.f32.vlgmr.msra.gmra.mxu0 %v225_v2 }
  0x81   : > { %493 = vmatmul.mubr.f32.vlgmr.msra.gmra.mxu1 %v227_v3 }
 0x140   : > { %v423_v4 = vpop.f32.mrf.mxu0 }
 0x141   : > { %v494_v5 = vpop.f32.mrf.mxu1 }
 0x142   : > { %v495_v6 = vadd.f32 %v494_v5, %v423_v4  ;;  %v425_v7 = vpop.f32.mrf.mxu0 }
 0x143   : > { %v496_v8 = vpop.f32.mrf.mxu1 }
 0x144   : > { %508 = vst [vmem:[%s212_s23] sm:$0xff] %v495_v6  ;;  %v497_v9 = vadd.f32 %v496_v8, %v425_v7 }
 0x146   : > { %509 = vst [vmem:[%s212_s23 + $0x8] sm:$0xff] %v497_v9 }
 0x147   : > { %793 = shalt.err (!%p790_p9)
}
 0x148   : > { %s794_s5 = scalar_lea.hbm %s525_s30, 256  ;;  %s798_s29 = scalar_lea.hbm %s1181_s2, 1024 }
 0x149   : > { %p795_p2 = scmp.ne.s32.totalorder %s525_s30, %s794_s5  ;;  %p799_p10 = scmp.lt.s32.totalorder %s525_s30, %s1181_s2 }
 0x14a   : > { %p800_p11 = scmp.lt.s32.totalorder %s798_s29, %s794_s5 }
 0x14b   : > { %p796_p4 = pnand %p795_p2, %p1193_p12 }
 0x14c   : > { %p801_p1 = por %p800_p11, %p799_p10 }
 0x14d   : > { %p797_p6 = pneg %p796_p4 }
 0x14f   : > { %p802_p3 = pnand %p801_p1, %p797_p6 }
 0x151   : > { %805 = shalt.err (!%p802_p3)
}
 0x152   : > { %656 = dma.vmem_to_hbm [thread:$0]  (%p1193_p12), %s528_s26, 256, %s525_s30, %s511_s25  }
 0x153 PF: > { %p673_p5 = scmp.ge.s32.totalorder %s864_s14, 2  ;;  %s539_s19 = sand.u32 1, %s844_s9  }
 0x154   : > { %p1194_p13 = scmp.ne.s32.totalorder %s1188_s22, 0  ;;  %s540_s18 = scalar_lea.sflag [#allocation5], %s539_s19 }
 0x156   : > { %p667_p0 = pnand %p673_p5, %p1194_p13 }
 0x158   : > { %p668_p7 = pneg %p667_p0 }
 0x15a   : > { %839 = dma.done.wait (%p668_p7), %s540_s18, 256  }
 0x15b   : > { %841 = vsyncadd (%p668_p7), %s540_s18, 4294967040  ;;  %s19_s14 = sadd.s32 1, %s864_s14   ;;  %s1195_s9 = smov %s848_s10 }
 0x15c   : > { %p16_p8 = scmp.ge.s32.totalorder %s19_s14, 6   ;;  %s1196_s10 = smov %s852_s11 }
 0x15d   : > { %s1197_s11 = smov %s988_s27  ;;  %s1198_s12 = smov %s860_s13 }
 0x15e   : > { %s1199_s13 = smov %s1201_s28  ;;  %18 = sbr.rel (!%p16_p8) target bundleno = 7 (0x7), region = 87 }
 0x163   :  { %545 = vsyncpa [#allocation4], 1 }
 0x164   :  { %547 = vsyncpa [#allocation4 + $0x1], 1 }
 0x165   :  { %548 = vsyncpa [#allocation7], 1 }
 0x166   :  { %550 = vsyncpa [#allocation7 + $0x1], 1 }
 0x167   :  { %551 = vsyncpa [#allocation5], 1 }
 0x168   :  { %553 = vsyncpa [#allocation5 + $0x1], 1 }

</bundles_post_ra>
